<compile_context>
chip_gen: v7x
topology: tpu7x:2x2x1
jax: 0.10.0
libtpu: 0.0.40
codegen_flags: <defaults>
</compile_context>

<pallas_src>
import functools

import jax
import jax.numpy as jnp
from jax.experimental import pallas as pl
from jax.experimental.pallas import tpu as pltpu

LANE = 128          # vreg lane width / MXU alignment
MAX_TILE_B = 512    # max rows of activations per grid step


def _round_up(n, m):
    return ((n + m - 1) // m) * m


def transfer_model_kernel(x_ref, w1_ref, b1_ref, w2_ref, b2_ref,
                          w3_ref, b3_ref, wt_ref, bt_ref, o_ref):
    """One batch tile: bf16 MXU inputs, f32 accumulation/epilogue, bf16 out."""
    # In-kernel f32 -> bf16 cast (VPU, free vs. the extra HBM pass it replaces).
    x = x_ref[...].astype(jnp.bfloat16)

    # base layer 1: Linear + ReLU
    h = jnp.dot(x, w1_ref[...], preferred_element_type=jnp.float32) + b1_ref[...]
    h = jnp.maximum(h, 0.0)

    # base layer 2: Linear + ReLU
    h = jnp.dot(h.astype(jnp.bfloat16), w2_ref[...],
                preferred_element_type=jnp.float32) + b2_ref[...]
    h = jnp.maximum(h, 0.0)

    # base layer 3: Linear (base model's trailing Sigmoid was stripped)
    h = jnp.dot(h.astype(jnp.bfloat16), w3_ref[...],
                preferred_element_type=jnp.float32) + b3_ref[...]

    # transfer_activation = ReLU (base_layers[-2] is a ReLU in this spec)
    h = jnp.maximum(h, 0.0)

    # transfer_layer + output_sigmoid
    h = jnp.dot(h.astype(jnp.bfloat16), wt_ref[...],
                preferred_element_type=jnp.float32) + bt_ref[...]
    o_ref[...] = jax.nn.sigmoid(h).astype(o_ref.dtype)


def pad_params_for_tpu(params):
    """Zero-pad weight *output* dims to 128 lanes; weights bf16, biases f32.

    The input-feature dim of W1 is left unpadded so x can be fed to the kernel
    in its native layout. Zero padding is exact: padded hidden columns get zero
    weight/bias, stay zero through ReLU, and their matching (zero) weight rows
    in the next layer contribute nothing. Padded output columns are sliced off
    outside the kernel.
    """
    def pad2(a, rows, cols, dtype):
        buf = jnp.zeros((rows, cols), dtype)
        return buf.at[:a.shape[0], :a.shape[1]].set(a.astype(dtype))

    d_in, h1 = params["w1"].shape
    h2 = params["w2"].shape[1]
    out = params["w3"].shape[1]
    h1p, h2p, op = (_round_up(v, LANE) for v in (h1, h2, out))

    padded = {
        "w1": pad2(params["w1"], d_in, h1p, jnp.bfloat16),
        "b1": pad2(params["b1"], 1, h1p, jnp.float32),
        "w2": pad2(params["w2"], h1p, h2p, jnp.bfloat16),
        "b2": pad2(params["b2"], 1, h2p, jnp.float32),
        "w3": pad2(params["w3"], h2p, op, jnp.bfloat16),
        "b3": pad2(params["b3"], 1, op, jnp.float32),
        "wt": pad2(params["wt"], op, op, jnp.bfloat16),
        "bt": pad2(params["bt"], 1, op, jnp.float32),
    }
    return padded, out


def _resident_spec(arr):
    """Full-array block, constant index_map -> DMA'd once, VMEM-resident.

    Single-buffered: the block index never changes across the grid, so a second
    pipeline buffer would only waste VMEM.
    """
    try:
        return pl.BlockSpec(arr.shape, lambda i: (0, 0),
                            pipeline_mode=pl.Buffered(1))
    except TypeError:  # older BlockSpec signature without pipeline_mode
        return pl.BlockSpec(arr.shape, lambda i: (0, 0))


def _pick_tile(batch):
    """Balanced, lane-aligned batch tile; >=2 grid steps when B>128 (v7x TCs)."""
    n_tiles = pl.cdiv(batch, MAX_TILE_B)
    if batch > LANE:
        n_tiles = max(n_tiles, 2)
    tile_b = _round_up(pl.cdiv(batch, n_tiles), LANE)
    tile_b = max(8, min(tile_b, _round_up(batch, 8)))
    return tile_b


@functools.partial(jax.jit, static_argnames=("out_features",))
def transfer_model_forward(x, padded, out_features):
    """x: (B, D_IN) float32; padded: lane-padded params from pad_params_for_tpu."""
    B, d_in = x.shape
    h1p = padded["w1"].shape[1]
    h2p = padded["w2"].shape[1]
    op = padded["wt"].shape[1]

    tile_b = _pick_tile(B)
    grid = (pl.cdiv(B, tile_b),)

    args = (x, padded["w1"], padded["b1"], padded["w2"], padded["b2"],
            padded["w3"], padded["b3"], padded["wt"], padded["bt"])

    # Explicit scoped-VMEM budget: resident weights (single-buffered) +
    # double-buffered activation tiles + headroom for f32 intermediates.
    weight_bytes = sum(int(v.size) * v.dtype.itemsize for v in padded.values())
    act_bytes = 2 * (tile_b * d_in * 4 + tile_b * op * 2)
    scratch_bytes = 8 * tile_b * max(h1p, h2p, op) * 4
    vmem_limit = min(max(weight_bytes + act_bytes + scratch_bytes + (4 << 20),
                         16 << 20),        # safe under v5e's 16 MiB default
                     64 << 20)              # within v7x physical VMEM

    flops = 2 * B * (d_in * h1p + h1p * h2p + h2p * op + op * op)
    bytes_accessed = (x.size * 4            # f32 activations in
                      + weight_bytes
                      + B * op * 2)         # bf16 output

    y = pl.pallas_call(
        transfer_model_kernel,
        out_shape=jax.ShapeDtypeStruct((B, op), jnp.bfloat16),
        grid=grid,
        in_specs=[pl.BlockSpec((tile_b, d_in), lambda i: (i, 0))]
                 + [_resident_spec(a) for a in args[1:]],
        out_specs=pl.BlockSpec((tile_b, op), lambda i: (i, 0)),
        compiler_params=pltpu.CompilerParams(
            dimension_semantics=("parallel",),
            vmem_limit_bytes=int(vmem_limit)),
        cost_estimate=pl.CostEstimate(
            flops=flops,
            transcendentals=B * op,
            bytes_accessed=bytes_accessed),
    )(*args)

    return y[:, :out_features]


def init_params(key, d_in, h1, h2, out):
    ks = jax.random.split(key, 8)
    scale = 0.1
    return {
        "w1": scale * jax.random.normal(ks[0], (d_in, h1), jnp.float32),
        "b1": scale * jax.random.normal(ks[1], (1, h1), jnp.float32),
        "w2": scale * jax.random.normal(ks[2], (h1, h2), jnp.float32),
        "b2": scale * jax.random.normal(ks[3], (1, h2), jnp.float32),
        "w3": scale * jax.random.normal(ks[4], (h2, out), jnp.float32),
        "b3": scale * jax.random.normal(ks[5], (1, out), jnp.float32),
        "wt": scale * jax.random.normal(ks[6], (out, out), jnp.float32),
        "bt": scale * jax.random.normal(ks[7], (1, out), jnp.float32),
    }


def reference_forward(x, p):
    h = jnp.maximum(x @ p["w1"] + p["b1"], 0.0)
    h = jnp.maximum(h @ p["w2"] + p["b2"], 0.0)
    h = h @ p["w3"] + p["b3"]
    h = jnp.maximum(h, 0.0)
    return jax.nn.sigmoid(h @ p["wt"] + p["bt"])


if __name__ == "__main__":
    key = jax.random.PRNGKey(0)
    k_x, k_p = jax.random.split(key)

    B, D_IN, H1, H2, OUT = 8, 32, 64, 64, 32
    x = jax.random.normal(k_x, (B, D_IN), jnp.float32)
    params = init_params(k_p, D_IN, H1, H2, OUT)

    padded_params, out_features = pad_params_for_tpu(params)
    y = transfer_model_forward(x, padded_params, out_features)
    y = jax.block_until_ready(y)

    y_ref = reference_forward(x, params)
    assert y.shape == (B, OUT)
    # bf16 MXU inputs / bf16 sigmoid output vs. an f32 reference -> loose tol.
    assert jnp.allclose(y.astype(jnp.float32), y_ref, atol=2e-2, rtol=2e-2), \
        "mismatch vs reference"

    print("KERNEL_OK")
</pallas_src>

<mosaic_0001>
module attributes {stable_mosaic.version = 11 : i64} {
  func.func @transfer_model_kernel(%arg0: i32, %arg1: memref<8x32xf32, #tpu.memory_space<vmem>>, %arg2: memref<32x128xbf16, #tpu.memory_space<vmem>>, %arg3: memref<1x128xf32, #tpu.memory_space<vmem>>, %arg4: memref<128x128xbf16, #tpu.memory_space<vmem>>, %arg5: memref<1x128xf32, #tpu.memory_space<vmem>>, %arg6: memref<128x128xbf16, #tpu.memory_space<vmem>>, %arg7: memref<1x128xf32, #tpu.memory_space<vmem>>, %arg8: memref<128x128xbf16, #tpu.memory_space<vmem>>, %arg9: memref<1x128xf32, #tpu.memory_space<vmem>>, %arg10: memref<8x128xbf16, #tpu.memory_space<vmem>>) attributes {dimension_semantics = [#tpu.dimension_semantics<parallel>], iteration_bounds = array<i64: 1>, scalar_prefetch = 0 : i64, scratch_operands = 0 : i64, tpu.core_type = #tpu.core_type<tc>, window_params = [{transform_indices = @transform_0, window_bounds = array<i64: 8, 32>}, {pipeline_mode = #tpu.pipeline_mode<synchronous>, transform_indices = @transform_1, window_bounds = array<i64: 32, 128>}, {pipeline_mode = #tpu.pipeline_mode<synchronous>, transform_indices = @transform_2, window_bounds = array<i64: 1, 128>}, {pipeline_mode = #tpu.pipeline_mode<synchronous>, transform_indices = @transform_3, window_bounds = array<i64: 128, 128>}, {pipeline_mode = #tpu.pipeline_mode<synchronous>, transform_indices = @transform_4, window_bounds = array<i64: 1, 128>}, {pipeline_mode = #tpu.pipeline_mode<synchronous>, transform_indices = @transform_5, window_bounds = array<i64: 128, 128>}, {pipeline_mode = #tpu.pipeline_mode<synchronous>, transform_indices = @transform_6, window_bounds = array<i64: 1, 128>}, {pipeline_mode = #tpu.pipeline_mode<synchronous>, transform_indices = @transform_7, window_bounds = array<i64: 128, 128>}, {pipeline_mode = #tpu.pipeline_mode<synchronous>, transform_indices = @transform_8, window_bounds = array<i64: 1, 128>}, {transform_indices = @transform_9, window_bounds = array<i64: 8, 128>}]} {
    %c0 = arith.constant 0 : index
    %c0_0 = arith.constant 0 : index
    %0 = vector.load %arg1[%c0, %c0_0] : memref<8x32xf32, #tpu.memory_space<vmem>>, vector<8x32xf32>
    %1 = arith.truncf %0 : vector<8x32xf32> to vector<8x32xbf16>
    %c0_1 = arith.constant 0 : index
    %c0_2 = arith.constant 0 : index
    %2 = vector.load %arg2[%c0_1, %c0_2] : memref<32x128xbf16, #tpu.memory_space<vmem>>, vector<32x128xbf16>
    %cst = arith.constant dense<0.000000e+00> : vector<8x128xf32>
    %3 = tpu.matmul %1, %2, %cst {dimension_numbers = #tpu.dot_dimension_numbers<[1], [0], [0], [1], [0, 0, 1, 1], [], []>} : vector<8x32xbf16>, vector<32x128xbf16>, vector<8x128xf32> -> vector<8x128xf32>
    %c0_3 = arith.constant 0 : index
    %c0_4 = arith.constant 0 : index
    %4 = vector.load %arg3[%c0_3, %c0_4] : memref<1x128xf32, #tpu.memory_space<vmem>>, vector<1x128xf32>
    %5 = vector.broadcast %4 : vector<1x128xf32> to vector<8x128xf32>
    %6 = arith.addf %3, %5 : vector<8x128xf32>
    %cst_5 = arith.constant 0.000000e+00 : f32
    %7 = vector.broadcast %cst_5 : f32 to vector<8x128xf32>
    %8 = arith.maximumf %6, %7 : vector<8x128xf32>
    %9 = arith.truncf %8 : vector<8x128xf32> to vector<8x128xbf16>
    %c0_6 = arith.constant 0 : index
    %c0_7 = arith.constant 0 : index
    %10 = vector.load %arg4[%c0_6, %c0_7] : memref<128x128xbf16, #tpu.memory_space<vmem>>, vector<128x128xbf16>
    %cst_8 = arith.constant dense<0.000000e+00> : vector<8x128xf32>
    %11 = tpu.matmul %9, %10, %cst_8 {dimension_numbers = #tpu.dot_dimension_numbers<[1], [0], [0], [1], [0, 0, 1, 1], [], []>} : vector<8x128xbf16>, vector<128x128xbf16>, vector<8x128xf32> -> vector<8x128xf32>
    %c0_9 = arith.constant 0 : index
    %c0_10 = arith.constant 0 : index
    %12 = vector.load %arg5[%c0_9, %c0_10] : memref<1x128xf32, #tpu.memory_space<vmem>>, vector<1x128xf32>
    %13 = vector.broadcast %12 : vector<1x128xf32> to vector<8x128xf32>
    %14 = arith.addf %11, %13 : vector<8x128xf32>
    %cst_11 = arith.constant 0.000000e+00 : f32
    %15 = vector.broadcast %cst_11 : f32 to vector<8x128xf32>
    %16 = arith.maximumf %14, %15 : vector<8x128xf32>
    %17 = arith.truncf %16 : vector<8x128xf32> to vector<8x128xbf16>
    %c0_12 = arith.constant 0 : index
    %c0_13 = arith.constant 0 : index
    %18 = vector.load %arg6[%c0_12, %c0_13] : memref<128x128xbf16, #tpu.memory_space<vmem>>, vector<128x128xbf16>
    %cst_14 = arith.constant dense<0.000000e+00> : vector<8x128xf32>
    %19 = tpu.matmul %17, %18, %cst_14 {dimension_numbers = #tpu.dot_dimension_numbers<[1], [0], [0], [1], [0, 0, 1, 1], [], []>} : vector<8x128xbf16>, vector<128x128xbf16>, vector<8x128xf32> -> vector<8x128xf32>
    %c0_15 = arith.constant 0 : index
    %c0_16 = arith.constant 0 : index
    %20 = vector.load %arg7[%c0_15, %c0_16] : memref<1x128xf32, #tpu.memory_space<vmem>>, vector<1x128xf32>
    %21 = vector.broadcast %20 : vector<1x128xf32> to vector<8x128xf32>
    %22 = arith.addf %19, %21 : vector<8x128xf32>
    %cst_17 = arith.constant 0.000000e+00 : f32
    %23 = vector.broadcast %cst_17 : f32 to vector<8x128xf32>
    %24 = arith.maximumf %22, %23 : vector<8x128xf32>
    %25 = arith.truncf %24 : vector<8x128xf32> to vector<8x128xbf16>
    %c0_18 = arith.constant 0 : index
    %c0_19 = arith.constant 0 : index
    %26 = vector.load %arg8[%c0_18, %c0_19] : memref<128x128xbf16, #tpu.memory_space<vmem>>, vector<128x128xbf16>
    %cst_20 = arith.constant dense<0.000000e+00> : vector<8x128xf32>
    %27 = tpu.matmul %25, %26, %cst_20 {dimension_numbers = #tpu.dot_dimension_numbers<[1], [0], [0], [1], [0, 0, 1, 1], [], []>} : vector<8x128xbf16>, vector<128x128xbf16>, vector<8x128xf32> -> vector<8x128xf32>
    %c0_21 = arith.constant 0 : index
    %c0_22 = arith.constant 0 : index
    %28 = vector.load %arg9[%c0_21, %c0_22] : memref<1x128xf32, #tpu.memory_space<vmem>>, vector<1x128xf32>
    %29 = vector.broadcast %28 : vector<1x128xf32> to vector<8x128xf32>
    %30 = arith.addf %27, %29 : vector<8x128xf32>
    %31 = arith.negf %30 : vector<8x128xf32>
    %32 = math.exp %31 : vector<8x128xf32>
    %cst_23 = arith.constant 1.000000e+00 : f32
    %33 = vector.broadcast %cst_23 : f32 to vector<8x128xf32>
    %34 = arith.addf %33, %32 : vector<8x128xf32>
    %35 = arith.divf %33, %34 : vector<8x128xf32>
    %36 = arith.truncf %35 : vector<8x128xf32> to vector<8x128xbf16>
    %c0_24 = arith.constant 0 : index
    %c0_25 = arith.constant 0 : index
    %37 = vector.load %arg10[%c0_24, %c0_25] : memref<8x128xbf16, #tpu.memory_space<vmem>>, vector<8x128xbf16>
    tpu.vector_store %arg10[%c0_24, %c0_25], %36 {strides = array<i32>} : memref<8x128xbf16, #tpu.memory_space<vmem>>, vector<8x128xbf16>,
    return
  }
  func.func @transform_0(%arg0: i32) -> (i32, i32) {
    %c0_i32 = arith.constant 0 : i32
    %c0_i32_0 = arith.constant 0 : i32
    return %arg0, %c0_i32 : i32, i32
  }
  func.func @transform_1(%arg0: i32) -> (i32, i32) {
    %c0_i32 = arith.constant 0 : i32
    %c0_i32_0 = arith.constant 0 : i32
    %c0_i32_1 = arith.constant 0 : i32
    return %c0_i32, %c0_i32_0 : i32, i32
  }
  func.func @transform_2(%arg0: i32) -> (i32, i32) {
    %c0_i32 = arith.constant 0 : i32
    %c0_i32_0 = arith.constant 0 : i32
    %c0_i32_1 = arith.constant 0 : i32
    return %c0_i32, %c0_i32_0 : i32, i32
  }
  func.func @transform_3(%arg0: i32) -> (i32, i32) {
    %c0_i32 = arith.constant 0 : i32
    %c0_i32_0 = arith.constant 0 : i32
    %c0_i32_1 = arith.constant 0 : i32
    return %c0_i32, %c0_i32_0 : i32, i32
  }
  func.func @transform_4(%arg0: i32) -> (i32, i32) {
    %c0_i32 = arith.constant 0 : i32
    %c0_i32_0 = arith.constant 0 : i32
    %c0_i32_1 = arith.constant 0 : i32
    return %c0_i32, %c0_i32_0 : i32, i32
  }
  func.func @transform_5(%arg0: i32) -> (i32, i32) {
    %c0_i32 = arith.constant 0 : i32
    %c0_i32_0 = arith.constant 0 : i32
    %c0_i32_1 = arith.constant 0 : i32
    return %c0_i32, %c0_i32_0 : i32, i32
  }
  func.func @transform_6(%arg0: i32) -> (i32, i32) {
    %c0_i32 = arith.constant 0 : i32
    %c0_i32_0 = arith.constant 0 : i32
    %c0_i32_1 = arith.constant 0 : i32
    return %c0_i32, %c0_i32_0 : i32, i32
  }
  func.func @transform_7(%arg0: i32) -> (i32, i32) {
    %c0_i32 = arith.constant 0 : i32
    %c0_i32_0 = arith.constant 0 : i32
    %c0_i32_1 = arith.constant 0 : i32
    return %c0_i32, %c0_i32_0 : i32, i32
  }
  func.func @transform_8(%arg0: i32) -> (i32, i32) {
    %c0_i32 = arith.constant 0 : i32
    %c0_i32_0 = arith.constant 0 : i32
    %c0_i32_1 = arith.constant 0 : i32
    return %c0_i32, %c0_i32_0 : i32, i32
  }
  func.func @transform_9(%arg0: i32) -> (i32, i32) {
    %c0_i32 = arith.constant 0 : i32
    %c0_i32_0 = arith.constant 0 : i32
    return %arg0, %c0_i32 : i32, i32
  }
}

</mosaic_0001>

<bundles_post_ra>
// kernel: transfer_model_forward.1
= control target key start
LH: loop header
LB: loop body
LE: loop exit
PB: predicated region body
PF: predicated region fallthrough
CT: control target
= control target key end

     0   :  { %14 = vsyncpa [#allocation3], 0  ;;  %s1079_s0 = inlined_call_operand.hbm [shape: f32[8,32], index: 0, kind: input, shape index: {}]   ;;  %s1080_s1 = inlined_call_operand.vmem [shape: bf16[32,128], index: 1, kind: input, shape index: {}]   ;;  %s1081_s2 = inlined_call_operand.vmem [shape: f32[1,128], index: 2, kind: input, shape index: {}]   ;;  %s1082_s3 = inlined_call_operand.hbm [shape: bf16[128,128], index: 3, kind: input, shape index: {}]   ;;  %s1083_s4 = inlined_call_operand.vmem [shape: f32[1,128], index: 4, kind: input, shape index: {}]   ;;  %s1084_s5 = inlined_call_operand.hbm [shape: bf16[128,128], index: 5, kind: input, shape index: {}]   ;;  %s1085_s6 = inlined_call_operand.hbm [shape: f32[1,128], index: 6, kind: input, shape index: {}]   ;;  %s1086_s7 = inlined_call_operand.hbm [shape: bf16[128,128], index: 7, kind: input, shape index: {}]   ;;  %s1087_s8 = inlined_call_operand.hbm [shape: f32[1,128], index: 8, kind: input, shape index: {}]   ;;  %s1088_s9 = inlined_call_operand.hbm [shape: bf16[8,128], index: 9, kind: output, shape index: {}]  }
   0x1   :  { %15 = vsyncpa [#allocation6], 0 }
   0x2   :  { %16 = vsyncpa [#allocation9], 0 }
   0x3   :  { %17 = vsyncpa [#allocation12], 0 }
   0x4   :  { %18 = vsyncpa [#allocation4], 0  ;;  %s879_s30 = smov [#allocation5]   ;;  %s715_s13 = scalar_lea.hbm %s1082_s3, 1024 }
   0x5   :  { %s38_s10 = sshll.u32 %s879_s30, 4  ;;  %p716_p0 = scmp.ne.s32.totalorder %s1082_s3, %s715_s13  ;;  %s39_s10 = int_to_ptr.vmem [resolvable:$true] %s38_s10 }
   0x6   :  { %p719_p1 = scmp.lt.u32.totalorder %s715_s13, %s1082_s3 }
   0x8   :  { %p721_p2 = pnand %p719_p1, %p716_p0 }
   0xa   :  { %724 = shalt.err (!%p721_p2)
}
   0xb   :  { %s725_s18 = scalar_lea.vmem %s39_s10, 1024  ;;  %p730_p4 = scmp.lt.s32.totalorder %s39_s10, %s39_s10 }
   0xc   :  { %p726_p3 = scmp.ne.s32.totalorder %s39_s10, %s725_s18  ;;  %p731_p5 = scmp.lt.s32.totalorder %s725_s18, %s725_s18 }
   0xe   :  { %p732_p6 = por %p731_p5, %p730_p4 }
  0x10   :  { %p733_p7 = pnand %p732_p6, %p726_p3 }
  0x12   :  { %736 = shalt.err (!%p733_p7)
}
  0x13   :  { %s880_s19 = smov 64   ;;  %s881_s20 = smov 4  }
  0x14   :  { %44 = dma.hbm_to_vmem [thread:$0]  %s1082_s3, 1024, %s39_s10, [#allocation6], %s880_s19, %s880_s19, %s881_s20  }
  0x15   :  { %s882_s23 = smov [#allocation8]   ;;  %s883_s25 = smov [#allocation2]  }
  0x16   :  { %s65_s24 = sshll.u32 %s882_s23, 4  ;;  %s25_s26 = sshll.u32 %s883_s25, 4  ;;  %s66_s24 = int_to_ptr.vmem [resolvable:$true] %s65_s24  ;;  %s26_s26 = int_to_ptr.vmem [resolvable:$true] %s25_s26 }
  0x17   :  { %s737_s29 = scalar_lea.hbm %s1085_s6, 16 }
  0x18   :  { %p738_p8 = scmp.ne.s32.totalorder %s1085_s6, %s737_s29  ;;  %p741_p9 = scmp.lt.u32.totalorder %s737_s29, %s1085_s6 }
  0x1a   :  { %p743_p10 = pnand %p741_p9, %p738_p8 }
  0x1c   :  { %746 = shalt.err (!%p743_p10)
}
  0x1d   :  { %s747_s3 = scalar_lea.vmem %s66_s24, 16  ;;  %s751_s10 = scalar_lea.vmem %s66_s24, 32 }
  0x1e   :  { %p748_p11 = scmp.ne.s32.totalorder %s66_s24, %s747_s3  ;;  %p752_p12 = scmp.lt.s32.totalorder %s66_s24, %s66_s24 }
  0x1f   :  { %p753_p13 = scmp.lt.s32.totalorder %s751_s10, %s747_s3 }
  0x21   :  { %p754_p0 = por %p753_p13, %p752_p12 }
  0x23   :  { %p755_p1 = pnand %p754_p0, %p748_p11 }
  0x25   :  { %758 = shalt.err (!%p755_p1)
}
  0x26   :  { %68 = dma.hbm_to_vmem [thread:$0]  %s1085_s6, 16, %s66_s24, [#allocation9]  }
  0x27   :  { %s759_s18 = scalar_lea.hbm %s1079_s0, 128 }
  0x28   :  { %p760_p2 = scmp.ne.s32.totalorder %s1079_s0, %s759_s18  ;;  %p763_p3 = scmp.lt.u32.totalorder %s759_s18, %s1079_s0 }
  0x2a   :  { %p765_p4 = pnand %p763_p3, %p760_p2 }
  0x2c   :  { %768 = shalt.err (!%p765_p4)
}
  0x2d   :  { %s769_s27 = scalar_lea.vmem %s26_s26, 128  ;;  %p774_p6 = scmp.lt.s32.totalorder %s26_s26, %s26_s26 }
  0x2e   :  { %p770_p5 = scmp.ne.s32.totalorder %s26_s26, %s769_s27  ;;  %p775_p7 = scmp.lt.s32.totalorder %s769_s27, %s769_s27 }
  0x30   :  { %p776_p8 = por %p775_p7, %p774_p6 }
  0x32   :  { %p777_p9 = pnand %p776_p8, %p770_p5 }
  0x34   :  { %780 = shalt.err (!%p777_p9)
}
  0x35   :  { %28 = dma.hbm_to_vmem [thread:$0]  %s1079_s0, 128, %s26_s26, [#allocation3]  }
  0x36   :  { %s884_s28 = smov [#allocation7]   ;;  %s885_s30 = smov [#allocation10]  }
  0x37   :  { %s52_s29 = sshll.u32 %s884_s28, 4  ;;  %s74_s11 = sshll.u32 %s885_s30, 4  ;;  %s53_s29 = int_to_ptr.vmem [resolvable:$true] %s52_s29  ;;  %s75_s11 = int_to_ptr.vmem [resolvable:$true] %s74_s11 }
  0x38   :  { %s781_s3 = scalar_lea.hbm %s1084_s5, 1024 }
  0x39   :  { %p782_p10 = scmp.ne.s32.totalorder %s1084_s5, %s781_s3  ;;  %p785_p11 = scmp.lt.u32.totalorder %s781_s3, %s1084_s5 }
  0x3b   :  { %p787_p12 = pnand %p785_p11, %p782_p10 }
  0x3d   :  { %790 = shalt.err (!%p787_p12)
}
  0x3e   :  { %s791_s0 = scalar_lea.vmem %s53_s29, 1024  ;;  %p796_p0 = scmp.lt.s32.totalorder %s53_s29, %s53_s29 }
  0x3f   :  { %p792_p13 = scmp.ne.s32.totalorder %s53_s29, %s791_s0  ;;  %p797_p1 = scmp.lt.s32.totalorder %s791_s0, %s791_s0 }
  0x41   :  { %p798_p2 = por %p797_p1, %p796_p0 }
  0x43   :  { %p799_p3 = pnand %p798_p2, %p792_p13 }
  0x45   :  { %802 = shalt.err (!%p799_p3)
}
  0x46   :  { %58 = dma.hbm_to_vmem [thread:$0]  %s1084_s5, 1024, %s53_s29, [#allocation6], %s880_s19, %s880_s19, %s881_s20  }
  0x47   :  { %s803_s22 = scalar_lea.hbm %s1086_s7, 1024 }
  0x48   :  { %p804_p4 = scmp.ne.s32.totalorder %s1086_s7, %s803_s22  ;;  %p807_p5 = scmp.lt.u32.totalorder %s803_s22, %s1086_s7 }
  0x4a   :  { %p809_p6 = pnand %p807_p5, %p804_p4 }
  0x4c   :  { %812 = shalt.err (!%p809_p6)
}
  0x4d   :  { %s813_s24 = scalar_lea.vmem %s75_s11, 1024  ;;  %p818_p8 = scmp.lt.s32.totalorder %s75_s11, %s75_s11 }
  0x4e   :  { %p814_p7 = scmp.ne.s32.totalorder %s75_s11, %s813_s24  ;;  %p819_p9 = scmp.lt.s32.totalorder %s813_s24, %s813_s24 }
  0x50   :  { %p820_p10 = por %p819_p9, %p818_p8 }
  0x52   :  { %p821_p11 = pnand %p820_p10, %p814_p7 }
  0x54   :  { %824 = shalt.err (!%p821_p11)
}
  0x55   :  { %80 = dma.hbm_to_vmem [thread:$0]  %s1086_s7, 1024, %s75_s11, [#allocation9], %s880_s19, %s880_s19, %s881_s20  }
  0x56   :  { %s886_s29 = smov [#allocation11]   ;;  %s825_s3 = scalar_lea.hbm %s1087_s8, 16 }
  0x57   :  { %s87_s30 = sshll.u32 %s886_s29, 4  ;;  %p826_p12 = scmp.ne.s32.totalorder %s1087_s8, %s825_s3  ;;  %s88_s30 = int_to_ptr.vmem [resolvable:$true] %s87_s30 }
  0x58   :  { %p829_p13 = scmp.lt.u32.totalorder %s825_s3, %s1087_s8 }
  0x5a   :  { %p831_p0 = pnand %p829_p13, %p826_p12 }
  0x5c   :  { %834 = shalt.err (!%p831_p0)
}
  0x5d   :  { %s835_s0 = scalar_lea.vmem %s88_s30, 16  ;;  %s839_s7 = scalar_lea.vmem %s88_s30, 32 }
  0x5e   :  { %p836_p1 = scmp.ne.s32.totalorder %s88_s30, %s835_s0  ;;  %p840_p2 = scmp.lt.s32.totalorder %s88_s30, %s88_s30 }
  0x5f   :  { %p841_p3 = scmp.lt.s32.totalorder %s839_s7, %s835_s0 }
  0x61   :  { %p842_p4 = por %p841_p3, %p840_p2 }
  0x63   :  { %p843_p5 = pnand %p842_p4, %p836_p1 }
  0x65   :  { %846 = shalt.err (!%p843_p5)
}
  0x66   :  { %90 = dma.hbm_to_vmem [thread:$0]  %s1087_s8, 16, %s88_s30, [#allocation12]  }
  0x67   :  { %869 = dma.done.wait [#allocation3], 128  }
  0x68   :  { %870 = vsyncadd [#allocation3], 4294967168 }
  0x69   :  { %871 = dma.done.wait [#allocation6], 2048  }
  0x6a   :  { %872 = vsyncadd [#allocation6], 4294965248 }
  0x6b   :  { %873 = dma.done.wait [#allocation9], 1040  }
  0x6c   :  { %874 = vsyncadd [#allocation9], 4294966256 }
  0x6d   :  { %875 = dma.done.wait [#allocation12], 16  }
  0x6e   :  { %876 = vsyncadd [#allocation12], 4294967280  ;;  %v887_v0 = vmov 0.0   ;;  %vm888_vm0 = vmmov 0   ;;  %v685_v1 = vld [vmem:[%s1080_s1] sm:$0xff]   ;;  %v686_v2 = vld [vmem:[%s1080_s1 + $0x8] sm:$0xff]  }
  0x6f   :  { %606 = vmatprep.subr.bf16.mxu0 %v887_v0  ;;  %610 = vmatprep.mubr.msk.bf16.mxu0 %vm888_vm0, %v887_v0  ;;  %v110_v3 = vld [vmem:[#allocation2] sm:$0xff]  ;;  %v687_v4 = vld [vmem:[#allocation5] sm:$0xff]   ;;  %v688_v6 = vld [vmem:[#allocation5 + $0x8] sm:$0xff]   ;;  %vm135_vm1 = vcmask 261120  }
  0x70   :  { %614 = vmatprep.subr.bf16.mxu1 %v887_v0  ;;  %630 = vmatprep.mubr.msk.bf16.mxu1 %vm888_vm0, %v887_v0  ;;  %v111_v5 = vpack.c.bf16 %v110_v3, %v110_v3  ;;  %v689_v7 = vld [vmem:[#allocation5 + $0x10] sm:$0xff]   ;;  %v690_v8 = vld [vmem:[#allocation5 + $0x18] sm:$0xff]   ;;  %v691_v9 = vld [vmem:[#allocation5 + $0x20] sm:$0xff]  }
  0x71   :  { %607 = vmatpush3.bf16.msra.mxu0 %v685_v1  ;;  %615 = vmatpush3.bf16.msra.mxu1 %v687_v4  ;;  %v692_v10 = vld [vmem:[#allocation5 + $0x28] sm:$0xff]   ;;  %v693_v11 = vld [vmem:[#allocation5 + $0x30] sm:$0xff]   ;;  %v694_v12 = vld [vmem:[#allocation5 + $0x38] sm:$0xff]  }
  0x72   :  { %608 = vmatprep.subr.bf16.mxu0 %v887_v0  ;;  %616 = vmatprep.subr.bf16.mxu1 %v887_v0  ;;  %v695_v13 = vld [vmem:[#allocation7] sm:$0xff]   ;;  %v696_v14 = vld [vmem:[#allocation7 + $0x8] sm:$0xff]   ;;  %v697_v15 = vld [vmem:[#allocation7 + $0x10] sm:$0xff]  }
  0x73   :  { %v698_v16 = vld [vmem:[#allocation7 + $0x18] sm:$0xff]   ;;  %v699_v17 = vld [vmem:[#allocation7 + $0x20] sm:$0xff]   ;;  %v700_v18 = vld [vmem:[#allocation7 + $0x28] sm:$0xff]  }
  0x74   :  { %v544_v19 = vld [vmem:[%s1081_s2] ss:$0 sm:$0xff]  ;;  %v701_v27 = vld [vmem:[#allocation7 + $0x30] sm:$0xff]   ;;  %v702_v28 = vld [vmem:[#allocation7 + $0x38] sm:$0xff]  }
  0x75   :  { %609 = vmatpush3.bf16.msra.mxu0 %v686_v2  ;;  %617 = vmatpush3.bf16.msra.mxu1 %v688_v6  ;;  %v703_v29 = vld [vmem:[#allocation10] sm:$0xff]   ;;  %v704_v30 = vld [vmem:[#allocation10 + $0x8] sm:$0xff]   ;;  %v705_v31 = vld [vmem:[#allocation10 + $0x10] sm:$0xff]  }
  0x76   :  { %634 = vmatprep.subr.bf16.mxu0 %v887_v0  ;;  %618 = vmatprep.subr.bf16.mxu1 %v887_v0  ;;  %v706_v32 = vld [vmem:[#allocation10 + $0x18] sm:$0xff]   ;;  %v707_v33 = vld [vmem:[#allocation10 + $0x20] sm:$0xff]   ;;  %v708_v34 = vld [vmem:[#allocation10 + $0x28] sm:$0xff]  }
  0x77   :  { %v548_v35 = vld [vmem:[%s1083_s4] ss:$0 sm:$0xff]  ;;  %v709_v43 = vld [vmem:[#allocation10 + $0x30] sm:$0xff]   ;;  %v710_v44 = vld [vmem:[#allocation10 + $0x38] sm:$0xff]   ;;  %s889_s4 = smov [#allocation13]  }
  0x78   :  { %611 = vmatmul.mubr.msk.bf16.vlgmr.msra.gmra.mrb[0].mxu0 %vm135_vm1, %v111_v5  ;;  %v557_v45 = vld [vmem:[#allocation8] ss:$0 sm:$0xff]  ;;  %v566_v53 = vld [vmem:[#allocation11] ss:$0 sm:$0xff]  ;;  %s532_s22 = sshll.u32 %s889_s4, 4  ;;  %s533_s22 = int_to_ptr.vmem [resolvable:$true] %s532_s22 }
  0x79   :  { %650 = vmatprep.mubr.msk.bf16.mxu0 %vm888_vm0, %v887_v0  ;;  %619 = vmatpush3.bf16.msra.mxu1 %v689_v7  ;;  %s847_s23 = scalar_lea.vmem %s533_s22, 64  ;;  %p852_p7 = scmp.lt.s32.totalorder %s533_s22, %s533_s22 }
  0x7a   :  { %620 = vmatprep.subr.bf16.mxu1 %v887_v0  ;;  %635 = vmatpush3.bf16.msra.mxu0 %v695_v13  ;;  %p848_p6 = scmp.ne.s32.totalorder %s533_s22, %s847_s23  ;;  %p853_p8 = scmp.lt.s32.totalorder %s847_s23, %s847_s23 }
  0x7b   :  { %636 = vmatprep.subr.bf16.mxu0 %v887_v0 }
  0x7c   :  { %p854_p9 = por %p853_p8, %p852_p7 }
  0x7d   :  { %621 = vmatpush3.bf16.msra.mxu1 %v690_v8 }
  0x7e   :  { %622 = vmatprep.subr.bf16.mxu1 %v887_v0  ;;  %637 = vmatpush3.bf16.msra.mxu0 %v696_v14  ;;  %p855_p10 = pnand %p854_p9, %p848_p6 }
  0x7f   :  { %638 = vmatprep.subr.bf16.mxu0 %v887_v0 }
  0x81   :  { %623 = vmatpush3.bf16.msra.mxu1 %v691_v9 }
  0x82   :  { %624 = vmatprep.subr.bf16.mxu1 %v887_v0  ;;  %639 = vmatpush3.bf16.msra.mxu0 %v697_v15 }
  0x83   :  { %640 = vmatprep.subr.bf16.mxu0 %v887_v0 }
  0x85   :  { %625 = vmatpush3.bf16.msra.mxu1 %v692_v10 }
  0x86   :  { %626 = vmatprep.subr.bf16.mxu1 %v887_v0  ;;  %641 = vmatpush3.bf16.msra.mxu0 %v698_v16 }
  0x87   :  { %642 = vmatprep.subr.bf16.mxu0 %v887_v0 }
  0x89   :  { %627 = vmatpush3.bf16.msra.mxu1 %v693_v11 }
  0x8a   :  { %628 = vmatprep.subr.bf16.mxu1 %v887_v0  ;;  %643 = vmatpush3.bf16.msra.mxu0 %v699_v17 }
  0x8b   :  { %644 = vmatprep.subr.bf16.mxu0 %v887_v0 }
  0x8d   :  { %629 = vmatpush3.bf16.msra.mxu1 %v694_v12 }
  0x8e   :  { %654 = vmatprep.subr.bf16.mxu1 %v887_v0  ;;  %645 = vmatpush3.bf16.msra.mxu0 %v700_v18 }
  0x8f   :  { %646 = vmatprep.subr.bf16.mxu0 %v887_v0 }
  0x92   :  { %647 = vmatpush3.bf16.msra.mxu0 %v701_v27 }
  0x93   :  { %648 = vmatprep.subr.bf16.mxu0 %v887_v0 }
  0x96   :  { %649 = vmatpush3.bf16.msra.mxu0 %v702_v28 }
 0x14b   :  { %v173_v20 = vpop.f32.mrb[0].mxu0 }
 0x14c   :  { %v174_v21 = vadd.f32 %v544_v19, %v173_v20  ;;  %v612_v22 = vpop.f32.mrb[1].mxu0 }
 0x14d   :  { %v176_v23 = vpop.f32.mrb[2].mxu0 }
 0x14e   :  { %v179_v24 = vmax.f32 %v174_v21, 0.0  ;;  %v613_v25 = vpop.f32.mrb[3].mxu0 }
 0x150   :  { %v180_v26 = vpack.c.bf16 %v179_v24, %v179_v24 }
 0x152   :  { %631 = vmatmul.mubr.bf16.vlgmr.msra.gmra.mrb[0].mxu1 %v180_v26 }
 0x153   :  { %670 = vmatprep.mubr.msk.bf16.mxu1 %vm888_vm0, %v887_v0  ;;  %655 = vmatpush3.bf16.msra.mxu1 %v703_v29 }
 0x154   :  { %656 = vmatprep.subr.bf16.mxu1 %v887_v0 }
 0x157   :  { %657 = vmatpush3.bf16.msra.mxu1 %v704_v30 }
 0x158   :  { %658 = vmatprep.subr.bf16.mxu1 %v887_v0 }
 0x15b   :  { %659 = vmatpush3.bf16.msra.mxu1 %v705_v31 }
 0x15c   :  { %660 = vmatprep.subr.bf16.mxu1 %v887_v0 }
 0x15f   :  { %661 = vmatpush3.bf16.msra.mxu1 %v706_v32 }
 0x160   :  { %662 = vmatprep.subr.bf16.mxu1 %v887_v0 }
 0x163   :  { %663 = vmatpush3.bf16.msra.mxu1 %v707_v33 }
 0x164   :  { %664 = vmatprep.subr.bf16.mxu1 %v887_v0 }
 0x167   :  { %665 = vmatpush3.bf16.msra.mxu1 %v708_v34 }
 0x168   :  { %666 = vmatprep.subr.bf16.mxu1 %v887_v0 }
 0x16b   :  { %667 = vmatpush3.bf16.msra.mxu1 %v709_v43 }
 0x16c   :  { %668 = vmatprep.subr.bf16.mxu1 %v887_v0 }
 0x16f   :  { %669 = vmatpush3.bf16.msra.mxu1 %v710_v44 }
 0x225   :  { %v286_v36 = vpop.f32.mrb[0].mxu1 }
 0x226   :  { %v287_v37 = vadd.f32 %v548_v35, %v286_v36  ;;  %v632_v38 = vpop.f32.mrb[1].mxu1 }
 0x227   :  { %v289_v39 = vpop.f32.mrb[2].mxu1 }
 0x228   :  { %v292_v40 = vmax.f32 %v287_v37, 0.0  ;;  %v633_v41 = vpop.f32.mrb[3].mxu1 }
 0x22a   :  { %v293_v42 = vpack.c.bf16 %v292_v40, %v292_v40 }
 0x22c   :  { %651 = vmatmul.mubr.bf16.vlgmr.msra.gmra.mrb[4].mxu0 %v293_v42 }
 0x2ff   :  { %v399_v46 = vpop.f32.mrb[4].mxu0 }
 0x300   :  { %v400_v47 = vadd.f32 %v557_v45, %v399_v46  ;;  %v652_v48 = vpop.f32.mrb[5].mxu0 }
 0x301   :  { %v402_v49 = vpop.f32.mrb[6].mxu0 }
 0x302   :  { %v405_v50 = vmax.f32 %v400_v47, 0.0  ;;  %v653_v51 = vpop.f32.mrb[7].mxu0 }
 0x304   :  { %v406_v52 = vpack.c.bf16 %v405_v50, %v405_v50 }
 0x306   :  { %671 = vmatmul.mubr.bf16.vlgmr.msra.gmra.mrb[4].mxu1 %v406_v52 }
 0x3d9   :  { %v512_v54 = vpop.f32.mrb[4].mxu1 }
 0x3da   :  { %v513_v55 = vadd.f32 %v566_v53, %v512_v54  ;;  %v672_v56 = vpop.f32.mrb[5].mxu1 }
 0x3db   :  { %v515_v57 = vpop.f32.mrb[6].mxu1 }
 0x3dc   :  { %v575_v58 = vmul.f32 -1.442695, %v513_v55  ;;  %v673_v59 = vpop.f32.mrb[7].mxu1 }
 0x3de   :  { %711 = vpow2.f32 %v575_v58 }
 0x3e8   :  { %v712_v60 = vpop.eup %711 }
 0x3e9   :  { %v521_v61 = vadd.f32 1.0, %v712_v60 }
 0x3eb   :  { %713 = vrcp.f32 %v521_v61 }
 0x3f5   :  { %v714_v62 = vpop.eup %713 }
 0x3f6   :  { %v524_v63 = vpack.c.bf16 %v714_v62, %v714_v62 }
 0x3f8   :  { %525 = vst [vmem:[#allocation13] sm:$0xf] %v524_v63 }
 0x3f9   :  { %858 = shalt.err (!%p855_p10)
}
 0x3fa   :  { %s859_s6 = scalar_lea.hbm %s1088_s9, 64 }
 0x3fb   :  { %p860_p11 = scmp.ne.s32.totalorder %s1088_s9, %s859_s6  ;;  %p863_p12 = scmp.lt.u32.totalorder %s859_s6, %s1088_s9 }
 0x3fd   :  { %p865_p13 = pnand %p863_p12, %p860_p11 }
 0x3ff   :  { %868 = shalt.err (!%p865_p13)
}
 0x400   :  { %535 = dma.vmem_to_hbm [thread:$0]  %s533_s22, 64, %s1088_s9, [#allocation4]  }
 0x401   :  { %877 = dma.done.wait [#allocation4], 64  }
 0x402   :  { %878 = vsyncadd [#allocation4], 4294967232 }
 0x403   :  { %539 = vsyncpa [#allocation3], 1 }
 0x404   :  { %540 = vsyncpa [#allocation6], 1 }
 0x405   :  { %541 = vsyncpa [#allocation9], 1 }
 0x406   :  { %542 = vsyncpa [#allocation12], 1 }
 0x407   :  { %543 = vsyncpa [#allocation4], 1 }

</bundles_post_ra>
